<compile_context>
chip_gen: v5e
topology: v5e:2x2
jax: 0.10.0
libtpu: 0.0.40
codegen_flags: <defaults>
</compile_context>

<pallas_src>
import math
import functools

import jax
import jax.numpy as jnp
import numpy as np
from jax.experimental import pallas as pl
from jax.experimental.pallas import tpu as pltpu

# ----------------------------- model config ---------------------------------
Z_DIM = 16
HIDDEN_DIM = 32
DEPTH = 3
COND_IN = 10
COND_DIM = 16
COND_HID = 128              # hidden width of cond_mlp's first Linear
TIME_EMB_DIM = 70           # TimePositionalEmbedding(70)
HALF_DIM = TIME_EMB_DIM // 2  # 35
BN_EPS = 1e-5
BATCH = 8                   # multiple of 8 (sublane) -> aligned slab rows
LANE = 128                  # activations padded to 128 lanes (lane-dense store)

CW1_K = 16                  # cond_in (10) padded to multiple of 8
TW1_K = 72                  # time emb dim (70) padded to multiple of 8


# ----------------------------- packed-slab layout ----------------------------
def _build_layout(depth=DEPTH, batch=BATCH):
    """Row layout of the single packed parameter slab (128 lanes wide).
    Weight blocks use their real contraction length rounded up to a multiple
    of 8; bias/const blocks are pre-broadcast to `batch` rows.  Every block
    starts on a multiple-of-8 row, so in-kernel slices stay tile aligned."""
    blocks = [("freq", batch),
              ("cw1", CW1_K), ("cb1", batch),
              ("cw2", COND_HID), ("cb2", batch),
              ("tw1", TW1_K), ("tb1", batch),
              ("tw2", HIDDEN_DIM), ("tb2", batch)]
    for i in range(depth - 1):
        top_k = Z_DIM if i == 0 else HIDDEN_DIM
        blocks += [(f"w{i}_top", top_k), (f"w{i}_bot", COND_DIM),
                   (f"b{i}", batch), (f"bn_g{i}", batch), (f"bn_b{i}", batch)]
    blocks += [("w_last", HIDDEN_DIM), ("b_last", batch)]
    off, acc = {}, 0
    for n, r in blocks:
        off[n] = acc
        acc += r
    return off, acc


LAYOUT_OFF, LAYOUT_ROWS = _build_layout()     # 456 rows x 128 lanes (~228 KB)


# ----------------------------- parameter init -------------------------------
def _linear_params(key, fan_in, fan_out):
    """PyTorch-style uniform(+-1/sqrt(fan_in)) init, deterministic."""
    kw, kb = jax.random.split(key)
    bound = 1.0 / math.sqrt(fan_in)
    w = jax.random.uniform(kw, (fan_in, fan_out), jnp.float32, -bound, bound)
    b = jax.random.uniform(kb, (1, fan_out), jnp.float32, -bound, bound)
    return w, b


def init_params(key):
    keys = jax.random.split(key, 4 + DEPTH)
    p = {}
    # cond_mlp: Linear(cond_in, 128) -> ReLU -> Linear(128, cond_dim)
    p["cw1"], p["cb1"] = _linear_params(keys[0], COND_IN, COND_HID)
    p["cw2"], p["cb2"] = _linear_params(keys[1], COND_HID, COND_DIM)
    # time_mlp: Emb(70) -> Linear(70, hidden) -> GELU -> Linear(hidden, hidden)
    p["tw1"], p["tb1"] = _linear_params(keys[2], TIME_EMB_DIM, HIDDEN_DIM)
    p["tw2"], p["tb2"] = _linear_params(keys[3], HIDDEN_DIM, HIDDEN_DIM)
    # main mlp
    mlp_w, mlp_b = [], []
    in_dims = [Z_DIM + COND_DIM] + [HIDDEN_DIM + COND_DIM] * (DEPTH - 2) + [HIDDEN_DIM]
    out_dims = [HIDDEN_DIM] * (DEPTH - 1) + [Z_DIM]
    for i in range(DEPTH):
        w, b = _linear_params(keys[4 + i], in_dims[i], out_dims[i])
        mlp_w.append(w)
        mlp_b.append(b)
    p["mlp_w"], p["mlp_b"] = mlp_w, mlp_b
    # batchnorm affine params (torch init: gamma=1, beta=0)
    p["bn_g"] = [jnp.ones((1, HIDDEN_DIM), jnp.float32) for _ in range(DEPTH - 1)]
    p["bn_b"] = [jnp.zeros((1, HIDDEN_DIM), jnp.float32) for _ in range(DEPTH - 1)]
    return p


# ----------------------------- host-side packing ------------------------------
def pack_params(p):
    """Pack all parameters into one zero-padded (LAYOUT_ROWS, 128) f32 slab."""
    slab = np.zeros((LAYOUT_ROWS, LANE), np.float32)

    def put(name, arr):
        arr = np.asarray(arr, np.float32)
        r0 = LAYOUT_OFF[name]
        slab[r0:r0 + arr.shape[0], :arr.shape[1]] = arr

    def put_row(name, row):          # broadcast a (1, d) row to BATCH rows
        row = np.asarray(row, np.float32).reshape(1, -1)
        put(name, np.broadcast_to(row, (BATCH, row.shape[1])))

    # constant sinusoidal frequencies, duplicated into lanes [0:35] and [35:70]
    # so one lane-select produces the full [sin | cos] embedding.
    scale = np.float32(math.log(10000.0) / (HALF_DIM - 1))
    freq = np.exp(np.arange(HALF_DIM, dtype=np.float32) * -scale).astype(np.float32)
    freq_dup = np.zeros((LANE,), np.float32)
    freq_dup[:HALF_DIM] = freq
    freq_dup[HALF_DIM:2 * HALF_DIM] = freq
    put_row("freq", freq_dup)

    # cond MLP
    put("cw1", p["cw1"]); put_row("cb1", p["cb1"])
    put("cw2", p["cw2"]); put_row("cb2", p["cb2"])

    # time MLP: tw1 stored unsplit in a 72-row block; rows 70:72 MUST stay zero
    # (they multiply the cos(0)=1 pad lanes of the embedding).
    put("tw1", p["tw1"])
    put_row("tb1", p["tb1"])
    put("tw2", p["tw2"]); put_row("tb2", p["tb2"])

    # denoising MLP (each concat-layer weight split at the [x | cond] boundary)
    for i in range(DEPTH - 1):
        w = np.asarray(p["mlp_w"][i], np.float32)
        split = Z_DIM if i == 0 else HIDDEN_DIM
        put(f"w{i}_top", w[:split])
        put(f"w{i}_bot", w[split:])
        put_row(f"b{i}", p["mlp_b"][i])
        put_row(f"bn_g{i}", p["bn_g"][i])
        put_row(f"bn_b{i}", p["bn_b"][i])

    put("w_last", p["mlp_w"][DEPTH - 1])
    put_row("b_last", p["mlp_b"][DEPTH - 1])
    return jnp.asarray(slab)


# ----------------------------- Pallas kernel --------------------------------
def denoise_kernel(off, depth, batch, params_ref, x_ref, t_ref, cond_ref, out_ref):
    def W(name, k):                               # (k, 128) weight block
        return params_ref[pl.ds(off[name], k), :]

    def V(name):                                  # (batch, 128) bias/const block
        return params_ref[pl.ds(off[name], batch), :]

    f32 = jnp.float32
    fmax = f32(np.finfo(np.float32).max)

    # --- cond path: nan_to_num(nan=-100, +/-inf clipped) -> Linear-ReLU-Linear ---
    c = cond_ref[...]                                           # (B, cond_in)
    c = jnp.where(jnp.isnan(c), f32(-100.0), c)
    c = jnp.clip(c, -fmax, fmax)
    c = jnp.concatenate([c, jnp.zeros((batch, CW1_K - COND_IN), f32)], axis=1)
    h = jnp.dot(c, W("cw1", CW1_K), preferred_element_type=f32) + V("cb1")
    h = jnp.maximum(h, 0.0)
    cproj = jnp.dot(h, W("cw2", COND_HID), preferred_element_type=f32) + V("cb2")
    cproj = cproj[:, :COND_DIM]                                 # (B, cond_dim)

    # --- time path: single matmul over [sin | cos] via lane-select ---
    t = t_ref[...].astype(f32)                                  # (B, 1)
    angle = t * V("freq")[:, :TW1_K]                            # (B, 72)
    lane = jax.lax.broadcasted_iota(jnp.int32, (batch, TW1_K), 1)
    emb = jnp.where(lane < HALF_DIM, jnp.sin(angle), jnp.cos(angle))
    th = jnp.dot(emb, W("tw1", TW1_K), preferred_element_type=f32) + V("tb1")
    th = 0.5 * th * (1.0 + jax.lax.erf(th * (1.0 / math.sqrt(2.0))))  # exact GELU
    t_emb = jnp.dot(th[:, :HIDDEN_DIM], W("tw2", HIDDEN_DIM),
                    preferred_element_type=f32) + V("tb2")

    # --- denoising MLP: concat replaced by split matmuls; loop-invariant
    #     cond @ W_bot (+ bias) terms hoisted out of the depth loop ---
    cbias = [jnp.dot(cproj, W(f"w{i}_bot", COND_DIM), preferred_element_type=f32)
             + V(f"b{i}") for i in range(depth - 1)]

    xx = x_ref[...]                                             # (B, z_dim)
    for i in range(depth - 1):
        top_k = Z_DIM if i == 0 else HIDDEN_DIM
        lhs = xx if i == 0 else xx[:, :HIDDEN_DIM]
        xx = jnp.dot(lhs, W(f"w{i}_top", top_k), preferred_element_type=f32) + cbias[i]
        xx = jnp.maximum(xx, 0.0) + t_emb
        # training-mode BatchNorm1d (batch mean, biased variance); padded lanes
        # stay identically zero so they never leak into real columns.
        mean = jnp.mean(xx, axis=0, keepdims=True)
        var = jnp.mean((xx - mean) ** 2, axis=0, keepdims=True)
        xx = (xx - mean) * jax.lax.rsqrt(var + BN_EPS) * V(f"bn_g{i}") + V(f"bn_b{i}")

    out = jnp.dot(xx[:, :HIDDEN_DIM], W("w_last", HIDDEN_DIM),
                  preferred_element_type=f32) + V("b_last")
    out_ref[...] = out                                          # full 128-lane store


_KERNEL = functools.partial(denoise_kernel, LAYOUT_OFF, DEPTH, BATCH)


# ----------------------------- wrapper ---------------------------------------
@jax.jit
def denoise_forward(param_slab, x, t, cond):
    B = x.shape[0]
    assert B == BATCH, "slab bias rows / BN batch statistics are built for the full batch"
    # TODO(synk): a diffusion *sampler* should fuse K timesteps into one
    # pallas_call (grid=(K,), param slab VMEM-resident, cond path gated under
    # @pl.when(step == 0)); a single pallas_call here keeps the nn.Module
    # forward semantics exactly.
    out = pl.pallas_call(
        _KERNEL,
        out_shape=jax.ShapeDtypeStruct((B, LANE), jnp.float32),
        in_specs=[pl.BlockSpec(memory_space=pltpu.MemorySpace.VMEM)] * 4,
        out_specs=pl.BlockSpec(memory_space=pltpu.MemorySpace.VMEM),
    )(param_slab,
      x.astype(jnp.float32),
      t.reshape(B, 1),                                 # int32 timesteps, cast in-kernel
      cond.reshape(B, COND_IN).astype(jnp.float32))
    return out[:, :Z_DIM]


# ----------------------------- pure-JAX reference ----------------------------
def reference_forward(p, x, t, cond):
    cond = cond.reshape(-1, COND_IN)
    fmax = jnp.finfo(jnp.float32).max
    c = jnp.where(jnp.isnan(cond), -100.0, cond)
    c = jnp.clip(c, -fmax, fmax)
    h = jnp.maximum(c @ p["cw1"] + p["cb1"], 0.0)
    cproj = h @ p["cw2"] + p["cb2"]

    scale = math.log(10000.0) / (HALF_DIM - 1)
    freq = jnp.exp(jnp.arange(HALF_DIM, dtype=jnp.float32) * -scale)
    angle = t.astype(jnp.float32)[:, None] * freq[None, :]
    emb = jnp.concatenate([jnp.sin(angle), jnp.cos(angle)], axis=-1)
    th = emb @ p["tw1"] + p["tb1"]
    th = 0.5 * th * (1.0 + jax.lax.erf(th / math.sqrt(2.0)))
    t_emb = th @ p["tw2"] + p["tb2"]

    xx = x
    for i in range(DEPTH - 1):
        xx = jnp.concatenate([xx, cproj], axis=1)
        xx = jnp.maximum(xx @ p["mlp_w"][i] + p["mlp_b"][i], 0.0) + t_emb
        mean = jnp.mean(xx, axis=0, keepdims=True)
        var = jnp.mean((xx - mean) ** 2, axis=0, keepdims=True)
        xx = (xx - mean) * jax.lax.rsqrt(var + BN_EPS) * p["bn_g"][i] + p["bn_b"][i]
    return xx @ p["mlp_w"][DEPTH - 1] + p["mlp_b"][DEPTH - 1]


# ----------------------------- main ------------------------------------------
if __name__ == "__main__":
    key = jax.random.PRNGKey(0)
    kp, kx, kt, kc = jax.random.split(key, 4)

    params = init_params(kp)
    param_slab = pack_params(params)          # single packed parameter DMA (~228 KB)

    x = jax.random.normal(kx, (BATCH, Z_DIM), jnp.float32)
    t = jax.random.randint(kt, (BATCH,), 0, 1000)
    cond = jax.random.normal(kc, (BATCH, COND_IN), jnp.float32)
    cond = cond.at[0, 0].set(jnp.nan)         # exercise nan_to_num path

    out = denoise_forward(param_slab, x, t, cond)
    out = jax.block_until_ready(out)

    ref = jax.block_until_ready(reference_forward(params, x, t, cond))
    np.testing.assert_allclose(np.asarray(out), np.asarray(ref), rtol=2e-3, atol=2e-3)
    assert out.shape == (BATCH, Z_DIM)

    print("KERNEL_OK")
</pallas_src>

<mosaic_0001>
module attributes {stable_mosaic.version = 11 : i64} {
  func.func @denoise_kernel(%arg0: memref<456x128xf32, #tpu.memory_space<vmem>>, %arg1: memref<8x16xf32, #tpu.memory_space<vmem>>, %arg2: memref<8x1xi32, #tpu.memory_space<vmem>>, %arg3: memref<8x10xf32, #tpu.memory_space<vmem>>, %arg4: memref<8x128xf32, #tpu.memory_space<vmem>>) attributes {dimension_semantics = [], scalar_prefetch = 0 : i64, scratch_operands = 0 : i64, tpu.core_type = #tpu.core_type<tc>} {
    %c0 = arith.constant 0 : index
    %c0_0 = arith.constant 0 : index
    %0 = vector.load %arg3[%c0, %c0_0] : memref<8x10xf32, #tpu.memory_space<vmem>>, vector<8x10xf32>
    %1 = arith.cmpf one, %0, %0 : vector<8x10xf32>
    %cst = arith.constant -1.000000e+02 : f32
    %2 = vector.broadcast %cst : f32 to vector<8x10xf32>
    %3 = arith.select %1, %2, %0 : vector<8x10xi1>, vector<8x10xf32>
    %cst_1 = arith.constant 0.000000e+00 : f32
    %cst_2 = arith.constant 3.40282347E+38 : f32
    %4 = arith.subf %cst_1, %cst_2 : f32
    %cst_3 = arith.constant 3.40282347E+38 : f32
    %5 = vector.broadcast %4 : f32 to vector<8x10xf32>
    %6 = arith.maximumf %5, %3 : vector<8x10xf32>
    %7 = vector.broadcast %cst_3 : f32 to vector<8x10xf32>
    %8 = arith.minimumf %7, %6 : vector<8x10xf32>
    %cst_4 = arith.constant 0.000000e+00 : f32
    %9 = vector.broadcast %cst_4 : f32 to vector<8x6xf32>
    %10 = tpu.concatenate %8, %9 in 1 : vector<8x10xf32>, vector<8x6xf32> -> vector<8x16xf32>
    %c8 = arith.constant 8 : index
    %c0_5 = arith.constant 0 : index
    %11 = vector.load %arg0[%c8, %c0_5] : memref<456x128xf32, #tpu.memory_space<vmem>>, vector<16x128xf32>
    %cst_6 = arith.constant dense<0.000000e+00> : vector<8x128xf32>
    %12 = tpu.matmul %10, %11, %cst_6 {dimension_numbers = #tpu.dot_dimension_numbers<[1], [0], [0], [1], [0, 0, 1, 1], [], []>} : vector<8x16xf32>, vector<16x128xf32>, vector<8x128xf32> -> vector<8x128xf32>
    %c24 = arith.constant 24 : index
    %c0_7 = arith.constant 0 : index
    %13 = vector.load %arg0[%c24, %c0_7] : memref<456x128xf32, #tpu.memory_space<vmem>>, vector<8x128xf32>
    %14 = arith.addf %12, %13 : vector<8x128xf32>
    %cst_8 = arith.constant 0.000000e+00 : f32
    %15 = vector.broadcast %cst_8 : f32 to vector<8x128xf32>
    %16 = arith.maximumf %14, %15 : vector<8x128xf32>
    %c32 = arith.constant 32 : index
    %c0_9 = arith.constant 0 : index
    %17 = vector.load %arg0[%c32, %c0_9] : memref<456x128xf32, #tpu.memory_space<vmem>>, vector<128x128xf32>
    %cst_10 = arith.constant dense<0.000000e+00> : vector<8x128xf32>
    %18 = tpu.matmul %16, %17, %cst_10 {dimension_numbers = #tpu.dot_dimension_numbers<[1], [0], [0], [1], [0, 0, 1, 1], [], []>} : vector<8x128xf32>, vector<128x128xf32>, vector<8x128xf32> -> vector<8x128xf32>
    %c160 = arith.constant 160 : index
    %c0_11 = arith.constant 0 : index
    %19 = vector.load %arg0[%c160, %c0_11] : memref<456x128xf32, #tpu.memory_space<vmem>>, vector<8x128xf32>
    %20 = arith.addf %18, %19 : vector<8x128xf32>
    %21 = vector.extract_strided_slice %20 {offsets = [0, 0], sizes = [8, 16], strides = [1, 1]} : vector<8x128xf32> to vector<8x16xf32>
    %c0_12 = arith.constant 0 : index
    %c0_13 = arith.constant 0 : index
    %22 = vector.load %arg2[%c0_12, %c0_13] : memref<8x1xi32, #tpu.memory_space<vmem>>, vector<8x1xi32>
    %23 = arith.sitofp %22 : vector<8x1xi32> to vector<8x1xf32>
    %c0_14 = arith.constant 0 : index
    %c0_15 = arith.constant 0 : index
    %24 = vector.load %arg0[%c0_14, %c0_15] : memref<456x128xf32, #tpu.memory_space<vmem>>, vector<8x128xf32>
    %25 = vector.extract_strided_slice %24 {offsets = [0, 0], sizes = [8, 72], strides = [1, 1]} : vector<8x128xf32> to vector<8x72xf32>
    %26 = vector.broadcast %23 : vector<8x1xf32> to vector<8x72xf32>
    %27 = arith.mulf %26, %25 : vector<8x72xf32>
    %28 = tpu.iota {dimensions = array<i32: 1>} : vector<8x72xi32>
    %c35_i32 = arith.constant 35 : i32
    %29 = vector.broadcast %c35_i32 : i32 to vector<8x72xi32>
    %30 = arith.cmpi slt, %28, %29 : vector<8x72xi32>
    %31 = math.sin %27 : vector<8x72xf32>
    %32 = math.cos %27 : vector<8x72xf32>
    %33 = arith.select %30, %31, %32 : vector<8x72xi1>, vector<8x72xf32>
    %c168 = arith.constant 168 : index
    %c0_16 = arith.constant 0 : index
    %34 = vector.load %arg0[%c168, %c0_16] : memref<456x128xf32, #tpu.memory_space<vmem>>, vector<72x128xf32>
    %cst_17 = arith.constant dense<0.000000e+00> : vector<8x128xf32>
    %35 = tpu.matmul %33, %34, %cst_17 {dimension_numbers = #tpu.dot_dimension_numbers<[1], [0], [0], [1], [0, 0, 1, 1], [], []>} : vector<8x72xf32>, vector<72x128xf32>, vector<8x128xf32> -> vector<8x128xf32>
    %c240 = arith.constant 240 : index
    %c0_18 = arith.constant 0 : index
    %36 = vector.load %arg0[%c240, %c0_18] : memref<456x128xf32, #tpu.memory_space<vmem>>, vector<8x128xf32>
    %37 = arith.addf %35, %36 : vector<8x128xf32>
    %cst_19 = arith.constant 5.000000e-01 : f32
    %38 = vector.broadcast %cst_19 : f32 to vector<8x128xf32>
    %39 = arith.mulf %38, %37 : vector<8x128xf32>
    %cst_20 = arith.constant 0.707106769 : f32
    %40 = vector.broadcast %cst_20 : f32 to vector<8x128xf32>
    %41 = arith.mulf %37, %40 : vector<8x128xf32>
    %42 = math.erf %41 : vector<8x128xf32>
    %cst_21 = arith.constant 1.000000e+00 : f32
    %43 = vector.broadcast %cst_21 : f32 to vector<8x128xf32>
    %44 = arith.addf %43, %42 : vector<8x128xf32>
    %45 = arith.mulf %39, %44 : vector<8x128xf32>
    %46 = vector.extract_strided_slice %45 {offsets = [0, 0], sizes = [8, 32], strides = [1, 1]} : vector<8x128xf32> to vector<8x32xf32>
    %c248 = arith.constant 248 : index
    %c0_22 = arith.constant 0 : index
    %47 = vector.load %arg0[%c248, %c0_22] : memref<456x128xf32, #tpu.memory_space<vmem>>, vector<32x128xf32>
    %cst_23 = arith.constant dense<0.000000e+00> : vector<8x128xf32>
    %48 = tpu.matmul %46, %47, %cst_23 {dimension_numbers = #tpu.dot_dimension_numbers<[1], [0], [0], [1], [0, 0, 1, 1], [], []>} : vector<8x32xf32>, vector<32x128xf32>, vector<8x128xf32> -> vector<8x128xf32>
    %c280 = arith.constant 280 : index
    %c0_24 = arith.constant 0 : index
    %49 = vector.load %arg0[%c280, %c0_24] : memref<456x128xf32, #tpu.memory_space<vmem>>, vector<8x128xf32>
    %50 = arith.addf %48, %49 : vector<8x128xf32>
    %c304 = arith.constant 304 : index
    %c0_25 = arith.constant 0 : index
    %51 = vector.load %arg0[%c304, %c0_25] : memref<456x128xf32, #tpu.memory_space<vmem>>, vector<16x128xf32>
    %cst_26 = arith.constant dense<0.000000e+00> : vector<8x128xf32>
    %52 = tpu.matmul %21, %51, %cst_26 {dimension_numbers = #tpu.dot_dimension_numbers<[1], [0], [0], [1], [0, 0, 1, 1], [], []>} : vector<8x16xf32>, vector<16x128xf32>, vector<8x128xf32> -> vector<8x128xf32>
    %c320 = arith.constant 320 : index
    %c0_27 = arith.constant 0 : index
    %53 = vector.load %arg0[%c320, %c0_27] : memref<456x128xf32, #tpu.memory_space<vmem>>, vector<8x128xf32>
    %54 = arith.addf %52, %53 : vector<8x128xf32>
    %c376 = arith.constant 376 : index
    %c0_28 = arith.constant 0 : index
    %55 = vector.load %arg0[%c376, %c0_28] : memref<456x128xf32, #tpu.memory_space<vmem>>, vector<16x128xf32>
    %cst_29 = arith.constant dense<0.000000e+00> : vector<8x128xf32>
    %56 = tpu.matmul %21, %55, %cst_29 {dimension_numbers = #tpu.dot_dimension_numbers<[1], [0], [0], [1], [0, 0, 1, 1], [], []>} : vector<8x16xf32>, vector<16x128xf32>, vector<8x128xf32> -> vector<8x128xf32>
    %c392 = arith.constant 392 : index
    %c0_30 = arith.constant 0 : index
    %57 = vector.load %arg0[%c392, %c0_30] : memref<456x128xf32, #tpu.memory_space<vmem>>, vector<8x128xf32>
    %58 = arith.addf %56, %57 : vector<8x128xf32>
    %c0_31 = arith.constant 0 : index
    %c0_32 = arith.constant 0 : index
    %59 = vector.load %arg1[%c0_31, %c0_32] : memref<8x16xf32, #tpu.memory_space<vmem>>, vector<8x16xf32>
    %c288 = arith.constant 288 : index
    %c0_33 = arith.constant 0 : index
    %60 = vector.load %arg0[%c288, %c0_33] : memref<456x128xf32, #tpu.memory_space<vmem>>, vector<16x128xf32>
    %cst_34 = arith.constant dense<0.000000e+00> : vector<8x128xf32>
    %61 = tpu.matmul %59, %60, %cst_34 {dimension_numbers = #tpu.dot_dimension_numbers<[1], [0], [0], [1], [0, 0, 1, 1], [], []>} : vector<8x16xf32>, vector<16x128xf32>, vector<8x128xf32> -> vector<8x128xf32>
    %62 = arith.addf %61, %54 : vector<8x128xf32>
    %cst_35 = arith.constant 0.000000e+00 : f32
    %63 = vector.broadcast %cst_35 : f32 to vector<8x128xf32>
    %64 = arith.maximumf %62, %63 : vector<8x128xf32>
    %65 = arith.addf %64, %50 : vector<8x128xf32>
    %cst_36 = arith.constant dense<0.000000e+00> : vector<128xf32>
    %66 = vector.multi_reduction <add>, %65, %cst_36 [0] : vector<8x128xf32> to vector<128xf32>
    %67 = vector.shape_cast %66 : vector<128xf32> to vector<1x128xf32>
    %cst_37 = arith.constant 8.000000e+00 : f32
    %68 = vector.broadcast %cst_37 : f32 to vector<1x128xf32>
    %69 = arith.divf %67, %68 : vector<1x128xf32>
    %70 = vector.broadcast %69 : vector<1x128xf32> to vector<8x128xf32>
    %71 = arith.subf %65, %70 : vector<8x128xf32>
    %72 = arith.mulf %71, %71 : vector<8x128xf32>
    %cst_38 = arith.constant dense<0.000000e+00> : vector<128xf32>
    %73 = vector.multi_reduction <add>, %72, %cst_38 [0] : vector<8x128xf32> to vector<128xf32>
    %74 = vector.shape_cast %73 : vector<128xf32> to vector<1x128xf32>
    %cst_39 = arith.constant 8.000000e+00 : f32
    %75 = vector.broadcast %cst_39 : f32 to vector<1x128xf32>
    %76 = arith.divf %74, %75 : vector<1x128xf32>
    %77 = vector.broadcast %69 : vector<1x128xf32> to vector<8x128xf32>
    %78 = arith.subf %65, %77 : vector<8x128xf32>
    %cst_40 = arith.constant 9.99999974E-6 : f32
    %79 = vector.broadcast %cst_40 : f32 to vector<1x128xf32>
    %80 = arith.addf %76, %79 : vector<1x128xf32>
    %81 = math.rsqrt %80 : vector<1x128xf32>
    %82 = vector.broadcast %81 : vector<1x128xf32> to vector<8x128xf32>
    %83 = arith.mulf %78, %82 : vector<8x128xf32>
    %c328 = arith.constant 328 : index
    %c0_41 = arith.constant 0 : index
    %84 = vector.load %arg0[%c328, %c0_41] : memref<456x128xf32, #tpu.memory_space<vmem>>, vector<8x128xf32>
    %85 = arith.mulf %83, %84 : vector<8x128xf32>
    %c336 = arith.constant 336 : index
    %c0_42 = arith.constant 0 : index
    %86 = vector.load %arg0[%c336, %c0_42] : memref<456x128xf32, #tpu.memory_space<vmem>>, vector<8x128xf32>
    %87 = arith.addf %85, %86 : vector<8x128xf32>
    %88 = vector.extract_strided_slice %87 {offsets = [0, 0], sizes = [8, 32], strides = [1, 1]} : vector<8x128xf32> to vector<8x32xf32>
    %c344 = arith.constant 344 : index
    %c0_43 = arith.constant 0 : index
    %89 = vector.load %arg0[%c344, %c0_43] : memref<456x128xf32, #tpu.memory_space<vmem>>, vector<32x128xf32>
    %cst_44 = arith.constant dense<0.000000e+00> : vector<8x128xf32>
    %90 = tpu.matmul %88, %89, %cst_44 {dimension_numbers = #tpu.dot_dimension_numbers<[1], [0], [0], [1], [0, 0, 1, 1], [], []>} : vector<8x32xf32>, vector<32x128xf32>, vector<8x128xf32> -> vector<8x128xf32>
    %91 = arith.addf %90, %58 : vector<8x128xf32>
    %cst_45 = arith.constant 0.000000e+00 : f32
    %92 = vector.broadcast %cst_45 : f32 to vector<8x128xf32>
    %93 = arith.maximumf %91, %92 : vector<8x128xf32>
    %94 = arith.addf %93, %50 : vector<8x128xf32>
    %cst_46 = arith.constant dense<0.000000e+00> : vector<128xf32>
    %95 = vector.multi_reduction <add>, %94, %cst_46 [0] : vector<8x128xf32> to vector<128xf32>
    %96 = vector.shape_cast %95 : vector<128xf32> to vector<1x128xf32>
    %cst_47 = arith.constant 8.000000e+00 : f32
    %97 = vector.broadcast %cst_47 : f32 to vector<1x128xf32>
    %98 = arith.divf %96, %97 : vector<1x128xf32>
    %99 = vector.broadcast %98 : vector<1x128xf32> to vector<8x128xf32>
    %100 = arith.subf %94, %99 : vector<8x128xf32>
    %101 = arith.mulf %100, %100 : vector<8x128xf32>
    %cst_48 = arith.constant dense<0.000000e+00> : vector<128xf32>
    %102 = vector.multi_reduction <add>, %101, %cst_48 [0] : vector<8x128xf32> to vector<128xf32>
    %103 = vector.shape_cast %102 : vector<128xf32> to vector<1x128xf32>
    %cst_49 = arith.constant 8.000000e+00 : f32
    %104 = vector.broadcast %cst_49 : f32 to vector<1x128xf32>
    %105 = arith.divf %103, %104 : vector<1x128xf32>
    %106 = vector.broadcast %98 : vector<1x128xf32> to vector<8x128xf32>
    %107 = arith.subf %94, %106 : vector<8x128xf32>
    %cst_50 = arith.constant 9.99999974E-6 : f32
    %108 = vector.broadcast %cst_50 : f32 to vector<1x128xf32>
    %109 = arith.addf %105, %108 : vector<1x128xf32>
    %110 = math.rsqrt %109 : vector<1x128xf32>
    %111 = vector.broadcast %110 : vector<1x128xf32> to vector<8x128xf32>
    %112 = arith.mulf %107, %111 : vector<8x128xf32>
    %c400 = arith.constant 400 : index
    %c0_51 = arith.constant 0 : index
    %113 = vector.load %arg0[%c400, %c0_51] : memref<456x128xf32, #tpu.memory_space<vmem>>, vector<8x128xf32>
    %114 = arith.mulf %112, %113 : vector<8x128xf32>
    %c408 = arith.constant 408 : index
    %c0_52 = arith.constant 0 : index
    %115 = vector.load %arg0[%c408, %c0_52] : memref<456x128xf32, #tpu.memory_space<vmem>>, vector<8x128xf32>
    %116 = arith.addf %114, %115 : vector<8x128xf32>
    %117 = vector.extract_strided_slice %116 {offsets = [0, 0], sizes = [8, 32], strides = [1, 1]} : vector<8x128xf32> to vector<8x32xf32>
    %c416 = arith.constant 416 : index
    %c0_53 = arith.constant 0 : index
    %118 = vector.load %arg0[%c416, %c0_53] : memref<456x128xf32, #tpu.memory_space<vmem>>, vector<32x128xf32>
    %cst_54 = arith.constant dense<0.000000e+00> : vector<8x128xf32>
    %119 = tpu.matmul %117, %118, %cst_54 {dimension_numbers = #tpu.dot_dimension_numbers<[1], [0], [0], [1], [0, 0, 1, 1], [], []>} : vector<8x32xf32>, vector<32x128xf32>, vector<8x128xf32> -> vector<8x128xf32>
    %c448 = arith.constant 448 : index
    %c0_55 = arith.constant 0 : index
    %120 = vector.load %arg0[%c448, %c0_55] : memref<456x128xf32, #tpu.memory_space<vmem>>, vector<8x128xf32>
    %121 = arith.addf %119, %120 : vector<8x128xf32>
    %c0_56 = arith.constant 0 : index
    %c0_57 = arith.constant 0 : index
    %122 = vector.load %arg4[%c0_56, %c0_57] : memref<8x128xf32, #tpu.memory_space<vmem>>, vector<8x128xf32>
    tpu.vector_store %arg4[%c0_56, %c0_57], %121 {strides = array<i32>} : memref<8x128xf32, #tpu.memory_space<vmem>>, vector<8x128xf32>,
    return
  }
}

</mosaic_0001>

<bundles_post_ra>
// kernel: denoise_forward.1
= control target key start
LH: loop header
LB: loop body
LE: loop exit
PB: predicated region body
PF: predicated region fallthrough
CT: control target
= control target key end

     0   :  { %9 = vsyncpa [#allocation3], 0  ;;  %s1029_s0 = inlined_call_operand.hbm [shape: f32[456,128], index: 0, kind: input, shape index: {}]   ;;  %s1030_s1 = inlined_call_operand.vmem [shape: f32[8,16], index: 1, kind: input, shape index: {}]   ;;  %s1031_s2 = inlined_call_operand.vmem [shape: s32[8,1], index: 2, kind: input, shape index: {}]   ;;  %s1032_s3 = inlined_call_operand.hbm [shape: f32[8,10], index: 3, kind: input, shape index: {}]   ;;  %s1033_s4 = inlined_call_operand.hbm [shape: f32[8,128], index: 4, kind: output, shape index: {}]  }
   0x1   :  { %10 = vsyncpa [#allocation6], 0 }
   0x2   :  { %11 = vsyncpa [#allocation4], 0  ;;  %s16_s17 = sshll.u32 %s1029_s0, 4  ;;  %s889_s18 = smov [#allocation2]   ;;  %s17_s17 = int_to_ptr.hbm [resolvable:$true] %s16_s17 }
   0x3   :  { %s18_s19 = sshll.u32 %s889_s18, 4  ;;  %s34_s22 = sshll.u32 %s1032_s3, 4  ;;  %s19_s19 = int_to_ptr.vmem [resolvable:$true] %s18_s19  ;;  %s35_s22 = int_to_ptr.hbm [resolvable:$true] %s34_s22 }
   0x4   :  { %s890_s23 = smov 128   ;;  %s891_s24 = smov 8  }
   0x5   :  { %24 = dma.hbm_to_vmem [thread:$0]  %s17_s17, 7296, %s19_s19, [#allocation3], %s890_s23, %s890_s23, %s891_s24  }
   0x6   :  { %s892_s25 = smov [#allocation5]  }
   0x7   :  { %s36_s26 = sshll.u32 %s892_s25, 4  ;;  %s37_s26 = int_to_ptr.vmem [resolvable:$true] %s36_s26 }
   0x8   :  { %39 = dma.hbm_to_vmem [thread:$0]  %s35_s22, 128, %s37_s26, [#allocation6]  }
   0x9   :  { %883 = dma.done.wait [#allocation3], 7296  }
   0xa   :  { %884 = vsyncadd [#allocation3], 4294960000 }
   0xb   :  { %885 = dma.done.wait [#allocation6], 128  }
   0xc   :  { %886 = vsyncadd [#allocation6], 4294967168  ;;  %v893_v0 = vmov 0   ;;  %v120_v1 = vld [vmem:[%s1031_s2] sm:$0xff]  ;;  %v48_v3 = vld [vmem:[#allocation5] sm:$0xff]  ;;  %vm53_vm1 = vcmask 80896  }
   0xd   :  { %802 = vset.pattern.permute.xlu0 %v893_v0  ;;  %v121_v2 = vcvt.s32.f32 %v120_v1  ;;  %vm49_vm0 = vcmp.ne.f32.partialorder %v48_v3, %v48_v3  ;;  %v56_v4 = vld [vmem:[#allocation2 + $0x10] sm:$0xff]  ;;  %v55_v7 = vld [vmem:[#allocation2 + $0x8] sm:$0xff]  ;;  %vm58_vm2 = vcmask 130048   ;;  %v122_v9 = vld [vmem:[#allocation2] sm:$0xff]  ;;  %v894_v32 = vmov 683565275  }
   0xe   :  { %v50_v5 = vsel %vm49_vm0, -100.0, %v48_v3  ;;  %76 = vmatpush.msra.mxu0 %v56_v4  ;;  %v450_v12 = vld [vmem:[#allocation2 + $0xe8] sm:$0xff]  ;;  %v449_v13 = vld [vmem:[#allocation2 + $0xe0] sm:$0xff]  ;;  %v448_v15 = vld [vmem:[#allocation2 + $0xd8] sm:$0xff]  ;;  %v895_v34 = vmov 2475754826  }
   0xf   :  { %125 = vperm.xlu0 %802, %v121_v2   ;;  %v773_v6 = vclamps-f32 %v50_v5, 3.4028235e+38  ;;  %463 = vmatpush.msra.mxu2 %v450_v12  ;;  %v447_v17 = vld [vmem:[#allocation2 + $0xd0] sm:$0xff]  ;;  %v446_v19 = vld [vmem:[#allocation2 + $0xc8] sm:$0xff]  ;;  %v445_v22 = vld [vmem:[#allocation2 + $0xc0] sm:$0xff]  ;;  %s762_s5 = sshll.u32 %s1033_s4, 4  ;;  %s763_s5 = int_to_ptr.hbm [resolvable:$true] %s762_s5 }
  0x10   :  { %77 = vmatpush.msra.mxu0 %v55_v7  ;;  %v444_v23 = vld [vmem:[#allocation2 + $0xb8] sm:$0xff]  ;;  %v443_v27 = vld [vmem:[#allocation2 + $0xb0] sm:$0xff]  ;;  %v442_v29 = vld [vmem:[#allocation2 + $0xa8] sm:$0xff]  ;;  %v896_v37 = vmov 2131351028  }
  0x11   :  { %v54_v8 = vsel %vm53_vm1, %v773_v6, 0.0  ;;  %464 = vmatpush.msra.mxu2 %v449_v13  ;;  %v897_v40 = vmov 2102212464   ;;  %v898_v43 = vmov 920167782  }
  0x12   :  { %774 = vmatmul.msk.f32.vlgmr.msra.gmra.mxu0 %vm58_vm2, %v54_v8  ;;  %v899_v46 = vmov 1326507024  }
  0x13   :  { %465 = vmatpush.msra.mxu2 %v448_v15 }
  0x15   :  { %466 = vmatpush.msra.mxu2 %v447_v17 }
  0x17   :  { %467 = vmatpush.msra.mxu2 %v446_v19 }
  0x19   :  { %468 = vmatpush.msra.mxu2 %v445_v22 }
  0x1b   :  { %469 = vmatpush.msra.mxu2 %v444_v23 }
  0x1d   :  { %470 = vmatpush.msra.mxu2 %v443_v27 }
  0x1f   :  { %471 = vmatpush.msra.mxu2 %v442_v29 }
  0x81   :  { %v126_v10 = vpop.permute.xlu0 %125 }
  0x82   :  { %v938_v11 = vmul.f32 %v126_v10, %v122_v9 }
  0x84   :  { %v135_v14 = vand.u32 2139095040, %v938_v11  ;;  %v132_v20 = vand.u32 2147483647, %v938_v11  ;;  %vm134_vm15 = vcmp.lt.s32.totalorder %v938_v11, 0 }
  0x86   :  { %v136_v16 = vshrl.u32 %v135_v14, 23  ;;  %v139_v24 = vand.u32 8388607, %v132_v20  ;;  %vm996_vm0 = vcmp.le.f32.partialorder %v132_v20, 0.7853982 }
  0x88   :  { %v775_v18 = vadd.s32 4294967169, %v136_v16  ;;  %v140_v30 = vor.u32 8388608, %v139_v24 }
  0x8a   :  { %v142_v21 = vadd.s32 1, %v775_v18  ;;  %v955_v53 = vshll.u32 %v140_v30, 8 }
  0x8c   :  { %vm143_vm3 = vcmp.gt.s32.totalorder %v142_v21, 0  ;;  %v181_v62 = vand.u32 65535, %v955_v53  ;;  %v182_v63 = vshrl.u32 %v955_v53, 16 }
  0x8d   :  { %v144_v25 = vsel %vm143_vm3, %v142_v21, 0 }
  0x8e   :  { %v146_v26 = vand.u32 31, %v144_v25  ;;  %v946_v31 = vshrl.u32 %v144_v25, 5 }
  0x90   :  { %v944_v28 = vsub.s32 32, %v146_v26  ;;  %v149_v33 = vshll.u32 %v894_v32, %v146_v26  ;;  %v152_v35 = vshll.u32 %v895_v34, %v146_v26  ;;  %v155_v39 = vshll.u32 %v896_v37, %v146_v26 }
  0x91   :  { %v158_v42 = vshll.u32 %v897_v40, %v146_v26  ;;  %v161_v45 = vshll.u32 %v898_v43, %v146_v26  ;;  %vm164_vm4 = vcmp.lt.s32.totalorder %v946_v31, 1  ;;  %vm167_vm5 = vcmp.lt.s32.totalorder %v946_v31, 4 }
  0x92   :  { %v150_v36 = vshrl.u32 %v895_v34, %v944_v28  ;;  %v153_v38 = vshrl.u32 %v896_v37, %v944_v28  ;;  %v156_v41 = vshrl.u32 %v897_v40, %v944_v28  ;;  %v159_v44 = vshrl.u32 %v898_v43, %v944_v28 }
  0x93   :  { %v162_v47 = vshrl.u32 %v899_v46, %v944_v28  ;;  %vm166_vm6 = vcmp.lt.s32.totalorder %v946_v31, 3  ;;  %vm165_vm7 = vcmp.lt.s32.totalorder %v946_v31, 2  ;;  %v148_v27 = vshrl.u32 %v894_v32, %v944_v28 }
  0x94   :  { %v151_v48 = vor.u32 %v150_v36, %v149_v33  ;;  %v154_v49 = vor.u32 %v153_v38, %v152_v35  ;;  %v157_v50 = vor.u32 %v156_v41, %v155_v39  ;;  %v160_v51 = vor.u32 %v159_v44, %v158_v42 }
  0x95   :  { %v163_v52 = vor.u32 %v162_v47, %v161_v45 }
  0x96   :  { %v172_v54 = vsel %vm164_vm4, %v151_v48, %v154_v49  ;;  %v176_v55 = vsel %vm164_vm4, %v154_v49, %v157_v50  ;;  %v173_v56 = vsel %vm167_vm5, %v160_v51, 920167782  ;;  %v169_v24 = vsel %vm167_vm5, %v157_v50, 2102212464 }
  0x97   :  { %v177_v57 = vsel %vm167_vm5, %v163_v52, 1326507024  ;;  %v174_v58 = vsel %vm166_vm6, %v157_v50, %v173_v56  ;;  %v168_v36 = vsel %vm164_vm4, %v148_v27, %v151_v48  ;;  %v170_v37 = vsel %vm166_vm6, %v154_v49, %v169_v24  ;;  %v90_v24 = vld [vmem:[#allocation2 + $0x58] sm:$0xff] }
  0x98   :  { %v178_v59 = vsel %vm166_vm6, %v160_v51, %v177_v57  ;;  %v175_v60 = vsel %vm165_vm7, %v172_v54, %v174_v58  ;;  %v171_v28 = vsel %vm165_vm7, %v168_v36, %v170_v37 }
  0x99   :  { %v179_v61 = vsel %vm165_vm7, %v176_v55, %v178_v59  ;;  %v205_v3 = vand.u32 65535, %v175_v60  ;;  %v206_v4 = vshrl.u32 %v175_v60, 16  ;;  %v225_v44 = vmul.u32 %v955_v53, %v171_v28  ;;  %v86_v28 = vld [vmem:[#allocation2 + $0x38] sm:$0xff] }
  0x9a   :  { %v183_v1 = vand.u32 65535, %v179_v61  ;;  %v184_v2 = vshrl.u32 %v179_v61, 16 }
  0x9b   :  { %v208_v7 = vmul.u32 %v206_v4, %v181_v62  ;;  %v209_v8 = vmul.u32 %v205_v3, %v182_v63  ;;  %v207_v13 = vmul.u32 %v205_v3, %v181_v62  ;;  %v210_v17 = vmul.u32 %v206_v4, %v182_v63 }
  0x9c   :  { %v186_v5 = vmul.u32 %v184_v2, %v181_v62  ;;  %v187_v6 = vmul.u32 %v183_v1, %v182_v63  ;;  %v185_v9 = vmul.u32 %v183_v1, %v181_v62  ;;  %v188_v12 = vmul.u32 %v184_v2, %v182_v63  ;;  %v98_v1 = vld [vmem:[#allocation2 + $0x98] sm:$0xff]  ;;  %v97_v2 = vld [vmem:[#allocation2 + $0x90] sm:$0xff] }
  0x9d   :  { %v211_v14 = vshll.u32 %v208_v7, 16  ;;  %v213_v19 = vshll.u32 %v209_v8, 16  ;;  %v212_v34 = vshrl.u32 %v208_v7, 16  ;;  %v214_v40 = vshrl.u32 %v209_v8, 16  ;;  %100 = vmatpush.msra.mxu1 %v98_v1  ;;  %v95_v7 = vld [vmem:[#allocation2 + $0x80] sm:$0xff] }
  0x9e   :  { %v189_v10 = vshll.u32 %v186_v5, 16  ;;  %v191_v15 = vshll.u32 %v187_v6, 16  ;;  %v190_v29 = vshrl.u32 %v186_v5, 16  ;;  %v192_v38 = vshrl.u32 %v187_v6, 16  ;;  %v96_v5 = vld [vmem:[#allocation2 + $0x88] sm:$0xff] }
  0x9f   :  { %vm215_vm9 = vc.u32 %v207_v13, %v211_v14  ;;  %v217_v21 = vadd.s32 %v211_v14, %v207_v13  ;;  %101 = vmatpush.msra.mxu1 %v97_v2  ;;  %v93_v13 = vld [vmem:[#allocation2 + $0x70] sm:$0xff] }
  0xa0   :  { %vm193_vm8 = vc.u32 %v185_v9, %v189_v10  ;;  %v195_v16 = vadd.s32 %v189_v10, %v185_v9  ;;  %v216_v23 = vsel %vm215_vm9, 1, %v893_v0  ;;  %v94_v9 = vld [vmem:[#allocation2 + $0x78] sm:$0xff]  ;;  %vm275_vm9 = vweird.f32 %v938_v11 }
  0xa1   :  { %v194_v18 = vsel %vm193_vm8, 1, %v893_v0  ;;  %v218_v26 = vadd.s32 %v216_v23, %v210_v17  ;;  %vm219_vm11 = vc.u32 %v217_v21, %v213_v19  ;;  %v221_v43 = vadd.s32 %v217_v21, %v213_v19  ;;  %102 = vmatpush.msra.mxu1 %v96_v5  ;;  %v92_v17 = vld [vmem:[#allocation2 + $0x68] sm:$0xff]  ;;  %v91_v21 = vld [vmem:[#allocation2 + $0x60] sm:$0xff]  ;;  %v550_v5 = vld [vmem:[#allocation2 + $0x138] sm:$0xff] }
  0xa2   :  { %v196_v22 = vadd.s32 %v194_v18, %v188_v12  ;;  %vm197_vm10 = vc.u32 %v195_v16, %v191_v15  ;;  %v220_v33 = vsel %vm219_vm11, 1, %v893_v0  ;;  %569 = vmatpush.msrb.mxu0 %v550_v5 }
  0xa3   :  { %v198_v25 = vsel %vm197_vm10, 1, %v893_v0  ;;  %v222_v35 = vadd.s32 %v220_v33, %v218_v26  ;;  %103 = vmatpush.msra.mxu1 %v95_v7  ;;  %vm452_vm10 = vcmask 588800  }
  0xa4   :  { %v200_v30 = vadd.s32 %v198_v25, %v196_v22 }
  0xa5   :  { %v223_v41 = vadd.s32 %v222_v35, %v212_v34  ;;  %104 = vmatpush.msra.mxu1 %v94_v9  ;;  %v88_v35 = vld [vmem:[#allocation2 + $0x48] sm:$0xff] }
  0xa6   :  { %v201_v39 = vadd.s32 %v200_v30, %v190_v29  ;;  %v89_v29 = vld [vmem:[#allocation2 + $0x50] sm:$0xff]  ;;  %v129_v30 = vlaneseq }
  0xa7   :  { %v224_v32 = vadd.s32 %v223_v41, %v214_v40  ;;  %105 = vmatpush.msra.mxu1 %v93_v13 }
  0xa8   :  { %v202_v42 = vadd.s32 %v201_v39, %v192_v38  ;;  %v87_v39 = vld [vmem:[#allocation2 + $0x40] sm:$0xff]  ;;  %v130_v40 = vand.u32 127, %v129_v30  ;;  %v575_v30 = vld [vmem:[#allocation2 + $0x178] sm:$0xff] }
  0xa9   :  { %v228_v0 = vadd.s32 1, %v224_v32  ;;  %106 = vmatpush.msra.mxu1 %v92_v17  ;;  %v600_v17 = vld [vmem:[#allocation2 + $0x128] sm:$0xff] }
  0xaa   :  { %vm227_vm12 = vc.u32 %v202_v42, %v221_v43  ;;  %v226_v31 = vadd.s32 %v221_v43, %v202_v42  ;;  %vm131_vm1 = vcmp.lt.s32.totalorder %v130_v40, 35 }
  0xab   :  { %v229_v45 = vsel %vm227_vm12, %v228_v0, %v224_v32  ;;  %107 = vmatpush.msra.mxu1 %v91_v21 }
  0xac   :  { %v230_v46 = vadd.s32 %v229_v45, %v225_v44  ;;  %v85_v45 = vld [vmem:[#allocation2 + $0x30] sm:$0xff] }
  0xad   :  { %108 = vmatpush.msra.mxu1 %v90_v24  ;;  %v520_v24 = vld [vmem:[#allocation2 + $0xf8] sm:$0xff] }
  0xae   :  { %v231_v47 = vadd.s32 536870912, %v230_v46 }
  0xaf   :  { %109 = vmatpush.msra.mxu1 %v89_v29  ;;  %v576_v29 = vld [vmem:[#allocation2 + $0x180] sm:$0xff] }
  0xb0   :  { %v232_v48 = vshrl.u32 %v231_v47, 30  ;;  %v84_v47 = vld [vmem:[#allocation2 + $0x28] sm:$0xff] }
  0xb1   :  { %110 = vmatpush.msra.mxu1 %v88_v35 }
  0xb2   :  { %v233_v50 = vshll.u32 %v232_v48, 30  ;;  %v256_v14 = vsub.s32 4, %v232_v48 }
  0xb3   :  { %111 = vmatpush.msra.mxu1 %v87_v39 }
  0xb4   :  { %v234_v49 = vsub.s32 %v230_v46, %v233_v50  ;;  %v257_v22 = vsel %vm134_vm15, %v256_v14, %v232_v48 }
  0xb5   :  { %v259_v25 = vsel %vm996_vm0, 0, %v257_v22  ;;  %112 = vmatpush.msra.mxu1 %v86_v28  ;;  %v521_v22 = vld [vmem:[#allocation2 + $0x100] sm:$0xff] }
  0xb6   :  { %vm235_vm13 = vcmp.lt.s32.totalorder %v234_v49, 0  ;;  %v236_v51 = vsub.s32 0, %v234_v49  ;;  %v276_v36 = vadd.s32 3, %v259_v25  ;;  %v431_v43 = vand.u32 3, %v259_v25 }
  0xb7   :  { %113 = vmatpush.msra.mxu1 %v85_v45 }
  0xb8   :  { %v237_v52 = vsel %vm235_vm13, %v236_v51, %v234_v49  ;;  %v277_v32 = vand.u32 3, %v276_v36  ;;  %vm432_vm3 = vcmp.lt.s32.totalorder %v431_v43, 2  ;;  %vm433_vm4 = vcmp.eq.s32.totalorder %v431_v43, 0 }
  0xb9   :  { %v238_v54 = vclz %v237_v52  ;;  %vm436_vm8 = vcmp.eq.s32.totalorder %v431_v43, 2  ;;  %v83_v52 = vld [vmem:[#allocation2 + $0x20] sm:$0xff]  ;;  %114 = vmatpush.msra.mxu1 %v84_v47 }
  0xba   :  { %vm278_vm5 = vcmp.lt.s32.totalorder %v277_v32, 2  ;;  %vm279_vm6 = vcmp.eq.s32.totalorder %v277_v32, 0  ;;  %vm282_vm7 = vcmp.eq.s32.totalorder %v277_v32, 2 }
  0xbb   :  { %v776_v55 = vadd.s32 4294967294, %v238_v54  ;;  %115 = vmatpush.msra.mxu1 %v83_v52 }
  0xbd   :  { %vm777_vm14 = vcmp.lt.s32.totalorder %v776_v55, 0 }
  0xbe   :  { %v241_v56 = vsel %vm777_vm14, 0, %v776_v55 }
  0xbf   :  { %v242_v57 = vsub.s32 32, %v241_v56  ;;  %v246_v58 = vsub.s32 4294967266, %v241_v56  ;;  %v243_v59 = vshll.u32 %v234_v49, %v241_v56 }
  0xc1   :  { %v244_v60 = vshrl.u32 %v226_v31, %v242_v57  ;;  %v247_v61 = vadd.s32 127, %v246_v58  ;;  %v57_v58 = vld [vmem:[#allocation2 + $0x18] sm:$0xff] }
  0xc3   :  { %v245_v53 = vor.u32 %v244_v60, %v243_v59  ;;  %v248_v62 = vshll.u32 %v247_v61, 23  ;;  %v79_v59 = vpop.f32.mrf.mxu0 }
  0xc4   :  { %v80_v60 = vadd.f32 %v79_v59, %v57_v58 }
  0xc5   :  { %v249_v63 = vor.u32 4788187, %v248_v62  ;;  %v252_v4 = vcvt.s32.f32 %v245_v53  ;;  %v451_v53 = vld [vmem:[#allocation2 + $0xf0] sm:$0xff] }
  0xc6   :  { %v82_v61 = vmax.f32 %v80_v60, 0.0 }
  0xc7   :  { %v250_v3 = vand.u32 2147483647, %v249_v63 }
  0xc8   :  { %116 = vmatmul.f32.vlgmr.msra.gmra.mxu1 %v82_v61  ;;  %v524_v61 = vld [vmem:[#allocation2 + $0x118] sm:$0xff] }
  0xc9   :  { %v253_v6 = vmul.f32 %v252_v4, %v250_v3 }
  0xcb   :  { %v254_v8 = vxor.u32 2147483648, %v253_v6 }
  0xcd   :  { %v255_v12 = vsel %vm134_vm15, %v254_v8, %v253_v6  ;;  %v99_v6 = vld [vmem:[#allocation2 + $0xa0] sm:$0xff]  ;;  %vm525_vm15 = vcmask 261120  }
  0xce   :  { %v258_v15 = vsel %vm996_vm0, %v938_v11, %v255_v12  ;;  %v549_v12 = vld [vmem:[#allocation2 + $0x130] sm:$0xff] }
  0xcf   :  { %v260_v16 = vmul.f32 %v258_v15, %v258_v15  ;;  %570 = vmatpush.msrb.mxu0 %v549_v12 }
  0xd1   :  { %v261_v18 = vmul.f32 -0.001358992, %v260_v16  ;;  %v268_v19 = vmul.f32 -0.00019511016, %v260_v16  ;;  %618 = vmatpush.msra.mxu0 %v600_v17  ;;  %v668_v17 = vld [vmem:[#allocation2 + $0x170] sm:$0xff] }
  0xd3   :  { %v262_v20 = vadd.f32 0.041655596, %v261_v18  ;;  %v269_v23 = vadd.f32 0.008332121, %v268_v19  ;;  %v599_v19 = vld [vmem:[#allocation2 + $0x120] sm:$0xff] }
  0xd4   :  { %619 = vmatpush.msra.mxu0 %v599_v19  ;;  %v667_v19 = vld [vmem:[#allocation2 + $0x168] sm:$0xff] }
  0xd5   :  { %v263_v26 = vmul.f32 %v262_v20, %v260_v16  ;;  %v270_v27 = vmul.f32 %v269_v23, %v260_v16  ;;  %v598_v23 = vld [vmem:[%s1030_s1] sm:$0xff]  ;;  %s901_s1 = smov [#allocation7]  }
  0xd6   :  { %s760_s28 = sshll.u32 %s901_s1, 4  ;;  %s761_s28 = int_to_ptr.vmem [resolvable:$true] %s760_s28 }
  0xd7   :  { %v264_v33 = vadd.f32 -0.4999988, %v263_v26  ;;  %v271_v34 = vadd.f32 -0.16666654, %v270_v27 }
  0xd9   :  { %v265_v37 = vmul.f32 %v264_v33, %v260_v16  ;;  %v272_v38 = vmul.f32 %v271_v34, %v260_v16  ;;  %v522_v16 = vld [vmem:[#allocation2 + $0x108] sm:$0xff] }
  0xdb   :  { %v266_v41 = vadd.f32 1.0, %v265_v37  ;;  %v273_v42 = vadd.f32 1.0, %v272_v38 }
  0xdd   :  { %v274_v0 = vmul.f32 %v273_v42, %v258_v15  ;;  %v283_v44 = vxor.u32 2147483648, %v266_v41  ;;  %v523_v15 = vld [vmem:[#allocation2 + $0x110] sm:$0xff] }
  0xde   :  { %541 = vmatpush.msra.mxu3 %v523_v15 }
  0xdf   :  { %v280_v46 = vxor.u32 2147483648, %v274_v0  ;;  %v284_v50 = vsel %vm282_vm7, %v283_v44, %v274_v0  ;;  %v438_v51 = vsel %vm436_vm8, %v283_v44, %v274_v0 }
  0xe0   :  { %542 = vmatpush.msra.mxu3 %v522_v16 }
  0xe1   :  { %v281_v48 = vsel %vm279_vm6, %v266_v41, %v280_v46  ;;  %v435_v49 = vsel %vm433_vm4, %v266_v41, %v280_v46 }
  0xe2   :  { %v285_v54 = vsel %vm278_vm5, %v281_v48, %v284_v50  ;;  %v439_v55 = vsel %vm432_vm3, %v435_v49, %v438_v51  ;;  %543 = vmatpush.msra.mxu3 %v521_v22  ;;  %v666_v22 = vld [vmem:[#allocation2 + $0x160] sm:$0xff] }
  0xe3   :  { %v286_v56 = vsel %vm275_vm9, nan, %v285_v54  ;;  %v440_v31 = vsel %vm275_vm9, nan, %v439_v55 }
  0xe4   :  { %v441_v57 = vsel %vm131_vm1, %v286_v56, %v440_v31  ;;  %544 = vmatpush.msra.mxu3 %v520_v24  ;;  %v900_v56 = vmov 8.0   ;;  %v551_v31 = vld [vmem:[#allocation2 + $0x140] sm:$0xff] }
  0xe5   :  { %781 = vmatmul.msk.f32.vlgmr.msra.gmra.mxu2 %vm452_vm10, %v441_v57 }
  0xe6   :  { %592 = vmatpush.msrb.mxu3 %v576_v29 }
  0xe8   :  { %593 = vmatpush.msrb.mxu3 %v575_v30 }
 0x145   :  { %v117_v7 = vpop.f32.mrf.mxu1 }
 0x146   :  { %v118_v10 = vadd.f32 %v117_v7, %v99_v6 }
 0x148   :  { %784 = vmatmul.msk.f32.vlgmr.msrb.gmra.mxu0 %vm58_vm2, %v118_v10 }
 0x150   :  { %786 = vmatmul.msk.f32.vlgmr.msra.gmra.mxu0 %vm58_vm2, %v598_v23 }
 0x168   :  { %v473_v62 = vpop.f32.mrf.mxu2 }
 0x169   :  { %v1007_v63 = vadd.f32 %v473_v62, %v451_v53 }
 0x16b   :  { %v477_v11 = vmul.f32 0.70710677, %v1007_v63  ;;  %v476_v51 = vmul.f32 0.5, %v1007_v63 }
 0x16d   :  { %v478_v1 = vmul.f32 %v477_v11, %v477_v11 }
 0x16f   :  { %v479_v2 = vmin.f32 %v478_v1, 16.0 }
 0x171   :  { %v480_v3 = vmul.f32 2.1237322e-06, %v479_v2  ;;  %v491_v4 = vmul.f32 3.8918573e-05, %v479_v2 }
 0x173   :  { %v481_v8 = vadd.f32 0.00028619796, %v480_v3  ;;  %v492_v9 = vadd.f32 0.001143296, %v491_v4 }
 0x175   :  { %v482_v13 = vmul.f32 %v481_v8, %v479_v2  ;;  %v493_v14 = vmul.f32 %v492_v9, %v479_v2 }
 0x177   :  { %v494_v18 = vadd.f32 0.014752088, %v493_v14  ;;  %v483_v21 = vadd.f32 0.0036580483, %v482_v13 }
 0x179   :  { %v495_v20 = vmul.f32 %v494_v18, %v479_v2  ;;  %v484_v26 = vmul.f32 %v483_v21, %v479_v2 }
 0x17b   :  { %v496_v25 = vadd.f32 0.112945676, %v495_v20  ;;  %v485_v34 = vadd.f32 0.05243302, %v484_v26  ;;  %v665_v20 = vld [vmem:[#allocation2 + $0x158] sm:$0xff] }
 0x17d   :  { %v497_v27 = vmul.f32 %v496_v25, %v479_v2  ;;  %v486_v37 = vmul.f32 %v485_v34, %v479_v2 }
 0x17f   :  { %v498_v33 = vadd.f32 0.4994258, %v497_v27  ;;  %v487_v38 = vadd.f32 0.18741608, %v486_v37 }
 0x181   :  { %v499_v35 = vmul.f32 %v498_v33, %v479_v2  ;;  %v488_v40 = vmul.f32 %v487_v38, %v479_v2  ;;  %v661_v38 = vld [vmem:[#allocation2 + $0x148] sm:$0xff] }
 0x183   :  { %v500_v36 = vadd.f32 1.0, %v499_v35  ;;  %v489_v28 = vadd.f32 1.1283791, %v488_v40  ;;  %v663_v40 = vld [vmem:[#allocation2 + $0x150] sm:$0xff] }
 0x185   :  { %803 = vrcp.f32 %v500_v36  ;;  %v512_v43 = vand.u32 2147483648, %v500_v36  ;;  %v510_v0 = vand.u32 2147483647, %v500_v36  ;;  %vm506_vm12 = vweird.f32 %v500_v36 }
 0x186   :  { %v490_v46 = vmul.f32 %v489_v28, %v477_v11  ;;  %805 = vrcp.f32 %v900_v56  ;;  %v577_v28 = vld [vmem:[#allocation2 + $0x188] sm:$0xff] }
 0x187   :  { %v513_v45 = vor.u32 1.1754944e-38, %v512_v43  ;;  %vm511_vm14 = vcmp.eq.f32.partialorder %v510_v0, 8.507059e+37 }
 0x18b   :  { %v804_v39 = vpop.eup %803 }
 0x18c   :  { %v502_v41 = vmul.f32 %v804_v39, %v500_v36  ;;  %vm507_vm11 = vweird.f32 %v804_v39  ;;  %v806_v59 = vpop.eup %805 }
 0x18d   :  { %vm508_vm13 = vmor %vm506_vm12, %vm507_vm11  ;;  %v633_v53 = vmul.f32 8.0, %v806_v59 }
 0x18e   :  { %v503_v42 = vsub.f32 1.0, %v502_v41 }
 0x18f   :  { %v634_v1 = vsub.f32 1.0, %v633_v53  ;;  %v726_v53 = vld [vmem:[#allocation2 + $0x1a0] sm:$0xff] }
 0x190   :  { %v504_v32 = vmul.f32 %v804_v39, %v503_v42 }
 0x191   :  { %v635_v4 = vmul.f32 %v806_v59, %v634_v1 }
 0x192   :  { %v505_v44 = vadd.f32 %v804_v39, %v504_v32 }
 0x193   :  { %v636_v7 = vadd.f32 %v806_v59, %v635_v4 }
 0x194   :  { %v509_v47 = vsel %vm508_vm13, %v804_v39, %v505_v44 }
 0x195   :  { %v514_v48 = vsel %vm511_vm14, %v513_v45, %v509_v47 }
 0x196   :  { %v515_v50 = vmul.f32 %v514_v48, %v490_v46 }
 0x198   :  { %v782_v49 = vclamps-f32 %v515_v50, 1.0 }
 0x19a   :  { %v518_v52 = vadd.f32 1.0, %v782_v49 }
 0x19c   :  { %v519_v54 = vmul.f32 %v518_v52, %v476_v51 }
 0x19e   :  { %783 = vmatmul.msk.f32.vlgmr.msra.gmra.mxu3 %vm525_vm15, %v519_v54 }
 0x19f   :  { %684 = vmatpush.msra.mxu3 %v668_v17 }
 0x1a1   :  { %685 = vmatpush.msra.mxu3 %v667_v19 }
 0x1a3   :  { %686 = vmatpush.msra.mxu3 %v666_v22 }
 0x1a5   :  { %687 = vmatpush.msra.mxu3 %v665_v20 }
 0x1a6   :  { %785 = vmatmul.msk.f32.vlgmr.msrb.gmra.mxu3 %vm58_vm2, %v118_v10  ;;  %vm637_vm2 = vweird.f32 %v806_v59 }
 0x1a7   :  { %v1018_v10 = vsel %vm637_vm2, %v806_v59, %v636_v7  ;;  %v728_v59 = vld [vmem:[#allocation2 + $0x1b0] sm:$0xff] }
 0x1c5   :  { %v572_v55 = vpop.f32.mrf.mxu0 }
 0x1c6   :  { %v573_v57 = vadd.f32 %v572_v55, %v551_v31 }
 0x1cd   :  { %v621_v58 = vpop.f32.mrf.mxu0 }
 0x1ce   :  { %v622_v60 = vadd.f32 %v621_v58, %v573_v57  ;;  %v729_v57 = vld [vmem:[#allocation2 + $0x1b8] sm:$0xff] }
 0x1cf   :  { %746 = vmatpush.msrb.mxu2 %v729_v57 }
 0x1d0   :  { %v624_v11 = vmax.f32 %v622_v60, 0.0  ;;  %v727_v60 = vld [vmem:[#allocation2 + $0x1a8] sm:$0xff] }
 0x1d1   :  { %747 = vmatpush.msrb.mxu2 %v728_v59 }
 0x1d3   :  { %748 = vmatpush.msrb.mxu2 %v727_v60 }
 0x1d5   :  { %749 = vmatpush.msrb.mxu2 %v726_v53 }
 0x221   :  { %v546_v62 = vpop.f32.mrf.mxu3 }
 0x222   :  { %v547_v63 = vadd.f32 %v546_v62, %v524_v61 }
 0x224   :  { %v625_v2 = vadd.f32 %v624_v11, %v547_v63 }
 0x226   :  { %v626_v3 = vrot.slane %v625_v2, 4 }
 0x228   :  { %v627_v5 = vadd.f32 %v626_v3, %v625_v2 }
 0x229   :  { %v595_v43 = vpop.f32.mrf.mxu3 }
 0x22a   :  { %v628_v6 = vrot.slane %v627_v5, 2  ;;  %v596_v32 = vadd.f32 %v595_v43, %v577_v28 }
 0x22c   :  { %v629_v8 = vadd.f32 %v628_v6, %v627_v5 }
 0x22e   :  { %v630_v9 = vrot.slane %v629_v8, 1 }
 0x230   :  { %v631_v12 = vadd.f32 %v630_v9, %v629_v8 }
 0x232   :  { %v639_v13 = vmul.f32 %v1018_v10, %v631_v12  ;;  %v722_v12 = vld [vmem:[#allocation2 + $0x190] sm:$0xff] }
 0x234   :  { %v640_v14 = vsub.f32 %v625_v2, %v639_v13 }
 0x236   :  { %v641_v15 = vmul.f32 %v640_v14, %v640_v14 }
 0x238   :  { %v642_v16 = vrot.slane %v641_v15, 4 }
 0x23a   :  { %v643_v18 = vadd.f32 %v642_v16, %v641_v15 }
 0x23c   :  { %v644_v21 = vrot.slane %v643_v18, 2 }
 0x23e   :  { %v645_v23 = vadd.f32 %v644_v21, %v643_v18 }
 0x240   :  { %v646_v24 = vrot.slane %v645_v23, 1 }
 0x242   :  { %v647_v25 = vadd.f32 %v646_v24, %v645_v23 }
 0x244   :  { %v648_v26 = vmul.f32 %v647_v25, %v1018_v10 }
 0x246   :  { %v649_v27 = vadd.f32 1e-05, %v648_v26 }
 0x248   :  { %807 = vrsqrt.f32 %v649_v27  ;;  %vm656_vm1 = vweird.f32 %v649_v27 }
 0x24e   :  { %v808_v29 = vpop.eup %807 }
 0x24f   :  { %v651_v30 = vmul.f32 %v808_v29, %v649_v27  ;;  %vm657_vm0 = vweird.f32 %v808_v29 }
 0x250   :  { %vm658_vm3 = vmor %vm656_vm1, %vm657_vm0 }
 0x251   :  { %v652_v33 = vmul.f32 %v808_v29, %v651_v30 }
 0x253   :  { %v653_v34 = vmul.f32 0.5, %v652_v33 }
 0x255   :  { %v654_v35 = vsub.f32 1.5, %v653_v34 }
 0x257   :  { %v655_v36 = vmul.f32 %v808_v29, %v654_v35 }
 0x259   :  { %v659_v37 = vsel %vm658_vm3, %v808_v29, %v655_v36 }
 0x25a   :  { %v660_v39 = vmul.f32 %v659_v37, %v640_v14  ;;  %v724_v14 = vld [vmem:[#allocation2 + $0x198] sm:$0xff] }
 0x25c   :  { %v662_v41 = vmul.f32 %v661_v38, %v660_v39 }
 0x25e   :  { %v664_v42 = vadd.f32 %v663_v40, %v662_v41 }
 0x260   :  { %787 = vmatmul.msk.f32.vlgmr.msra.gmra.mxu3 %vm525_vm15, %v664_v42 }
 0x2e3   :  { %v689_v0 = vpop.f32.mrf.mxu3 }
 0x2e4   :  { %v690_v44 = vadd.f32 %v689_v0, %v596_v32 }
 0x2e6   :  { %v692_v45 = vmax.f32 %v690_v44, 0.0 }
 0x2e8   :  { %v693_v46 = vadd.f32 %v692_v45, %v547_v63 }
 0x2ea   :  { %v694_v47 = vrot.slane %v693_v46, 4 }
 0x2ec   :  { %v695_v48 = vadd.f32 %v694_v47, %v693_v46 }
 0x2ee   :  { %v696_v50 = vrot.slane %v695_v48, 2 }
 0x2f0   :  { %v697_v49 = vadd.f32 %v696_v50, %v695_v48 }
 0x2f2   :  { %v698_v51 = vrot.slane %v697_v49, 1 }
 0x2f4   :  { %v699_v52 = vadd.f32 %v698_v51, %v697_v49 }
 0x2f6   :  { %v700_v54 = vmul.f32 %v699_v52, %v1018_v10 }
 0x2f8   :  { %v701_v55 = vsub.f32 %v693_v46, %v700_v54 }
 0x2fa   :  { %v702_v56 = vmul.f32 %v701_v55, %v701_v55 }
 0x2fc   :  { %v703_v31 = vrot.slane %v702_v56, 4 }
 0x2fe   :  { %v704_v58 = vadd.f32 %v703_v31, %v702_v56 }
 0x300   :  { %v705_v61 = vrot.slane %v704_v58, 2 }
 0x302   :  { %v706_v62 = vadd.f32 %v705_v61, %v704_v58 }
 0x304   :  { %v707_v11 = vrot.slane %v706_v62, 1 }
 0x306   :  { %v708_v63 = vadd.f32 %v707_v11, %v706_v62 }
 0x308   :  { %v709_v1 = vmul.f32 %v708_v63, %v1018_v10  ;;  %v730_v10 = vld [vmem:[#allocation2 + $0x1c0] sm:$0xff] }
 0x30a   :  { %v710_v2 = vadd.f32 1e-05, %v709_v1 }
 0x30c   :  { %809 = vrsqrt.f32 %v710_v2  ;;  %vm717_vm5 = vweird.f32 %v710_v2 }
 0x312   :  { %v810_v3 = vpop.eup %809 }
 0x313   :  { %v712_v4 = vmul.f32 %v810_v3, %v710_v2  ;;  %vm718_vm4 = vweird.f32 %v810_v3 }
 0x314   :  { %vm719_vm6 = vmor %vm717_vm5, %vm718_vm4 }
 0x315   :  { %v713_v5 = vmul.f32 %v810_v3, %v712_v4 }
 0x317   :  { %v714_v6 = vmul.f32 0.5, %v713_v5 }
 0x319   :  { %v715_v7 = vsub.f32 1.5, %v714_v6 }
 0x31b   :  { %v716_v8 = vmul.f32 %v810_v3, %v715_v7 }
 0x31d   :  { %v720_v9 = vsel %vm719_vm6, %v810_v3, %v716_v8 }
 0x31e   :  { %v721_v13 = vmul.f32 %v720_v9, %v701_v55 }
 0x320   :  { %v723_v15 = vmul.f32 %v722_v12, %v721_v13 }
 0x322   :  { %v725_v16 = vadd.f32 %v724_v14, %v723_v15 }
 0x324   :  { %788 = vmatmul.msk.f32.vlgmr.msrb.gmra.mxu2 %vm525_vm15, %v725_v16 }
 0x3a7   :  { %v751_v17 = vpop.f32.mrf.mxu2 }
 0x3a8   :  { %v752_v18 = vadd.f32 %v751_v17, %v730_v10 }
 0x3aa   :  { %754 = vst [vmem:[#allocation7] sm:$0xff] %v752_v18 }
 0x3ab   :  { %765 = dma.vmem_to_hbm [thread:$0]  %s761_s28, 128, %s763_s5, [#allocation4]  }
 0x3ac   :  { %887 = dma.done.wait [#allocation4], 128  }
 0x3ad   :  { %888 = vsyncadd [#allocation4], 4294967168 }
 0x3ae   :  { %770 = vsyncpa [#allocation3], 1 }
 0x3af   :  { %771 = vsyncpa [#allocation6], 1 }
 0x3b0   :  { %772 = vsyncpa [#allocation4], 1 }

</bundles_post_ra>
